<compile_context>
chip_gen: v5e
topology: v5e:2x2
jax: 0.10.0
libtpu: 0.0.40
codegen_flags: <defaults>
</compile_context>

<pallas_src>
import jax
import jax.numpy as jnp
from jax.experimental import pallas as pl
from jax.experimental.pallas import tpu as pltpu


def policy_net_kernel(x_ref, w1_ref, b1_ref, w2_ref, b2_ref, out_ref):
    # x_ref:  (tb, Kp) f32   streamed activation tile (Kp = 8, zero-padded K)
    # w1_ref: (Kp, H) f32, b1_ref: (1, H) f32            resident
    # w2_ref: (H, A_pad) bf16                            resident (A_pad = 128)
    # b2_ref: (1, A) f32                                 resident
    # out_ref:(tb, A) f32    real action columns only
    A = out_ref.shape[-1]

    # --- fc1 + ReLU on the MXU: (tb, 8) @ (8, 128) sliver, f32 accumulate ---
    h = jnp.dot(x_ref[...], w1_ref[...], preferred_element_type=jnp.float32)
    h = jnp.maximum(h + b1_ref[...], 0.0)                        # (tb, H)

    # --- fc2 on the MXU in bf16 (native MXU dtype), f32 accumulation.
    #     The (tb, 128) lane-dense slab stays internal; only A columns are real.
    logits_full = jnp.dot(h.astype(jnp.bfloat16), w2_ref[...],
                          preferred_element_type=jnp.float32)    # (tb, A_pad)
    logits = logits_full[:, :A] + b2_ref[...]                    # (tb, A) f32

    # --- Softmax(dim=-1) over the real columns, numerically stable, exact ---
    m = jnp.max(logits, axis=-1, keepdims=True)
    e = jnp.exp(logits - m)
    probs = e / jnp.sum(e, axis=-1, keepdims=True)
    out_ref[...] = probs.astype(out_ref.dtype)


def _round_up(n, m):
    return ((n + m - 1) // m) * m


def policy_net_forward(x, w1, b1, w2, b2, *, tile_b=2048, lane=128, k_pad=8):
    """x: (B, state_dim) f32 -> (B, action_dim) f32 action probabilities."""
    B, K = x.shape
    H, A = w2.shape
    assert w1.shape == (K, H) and A >= 1

    # Pad the state dim to 8 so fc1 is a clean MXU sliver (zero rows / cols).
    Kp = _round_up(max(K, k_pad), k_pad)
    x_k = x if Kp == K else jnp.pad(x, ((0, 0), (0, Kp - K)))
    w1_p = jnp.zeros((Kp, H), jnp.float32).at[:K, :].set(w1.astype(jnp.float32))
    b1_2d = b1.reshape(1, H).astype(jnp.float32)

    # w2 padded to a full 128-lane width for the MXU and stored bf16; only the
    # first A columns are real and the softmax / store never touch the padding.
    a_pad = _round_up(max(A, lane), lane)
    w2_p = jnp.zeros((H, a_pad), jnp.bfloat16).at[:, :A].set(
        w2.astype(jnp.bfloat16))
    b2_2d = b2.reshape(1, A).astype(jnp.float32)

    # One large batch tile (grid = 1 step for rollout-sized batches); the
    # kernel is fixed-overhead bound, and even tb=2048 uses only a few hundred
    # KB of VMEM (fine on v5e/v6e 128 MiB and v7x 64 MiB).
    tb = min(tile_b, _round_up(B, 8))            # block sublane dim % 8 == 0
    Bp = _round_up(B, tb)
    x_p = x_k if Bp == B else jnp.pad(x_k, ((0, Bp - B), (0, 0)))
    grid = (Bp // tb,)

    out = pl.pallas_call(
        policy_net_kernel,
        out_shape=jax.ShapeDtypeStruct((Bp, A), jnp.float32),
        grid=grid,
        in_specs=[
            pl.BlockSpec((tb, Kp), lambda i: (i, 0)),     # stream x tiles
            pl.BlockSpec((Kp, H), lambda i: (0, 0)),      # w1 resident
            pl.BlockSpec((1, H), lambda i: (0, 0)),       # b1 resident
            pl.BlockSpec((H, a_pad), lambda i: (0, 0)),   # w2 (bf16) resident
            pl.BlockSpec((1, A), lambda i: (0, 0)),       # b2 resident
        ],
        out_specs=pl.BlockSpec((tb, A), lambda i: (i, 0)),
        compiler_params=pltpu.CompilerParams(
            dimension_semantics=("arbitrary",)),
    )(x_p, w1_p, b1_2d, w2_p, b2_2d)

    return out[:B, :]


def init_params(key, state_dim, hidden, action_dim):
    # Deterministic synthetic init (PyTorch-like uniform fan-in scaling).
    # Weights stored transposed vs PyTorch: kernel computes x @ W + b.
    k1, k2, k3, k4 = jax.random.split(key, 4)
    lim1 = 1.0 / jnp.sqrt(state_dim)
    lim2 = 1.0 / jnp.sqrt(hidden)
    w1 = jax.random.uniform(k1, (state_dim, hidden), jnp.float32, -lim1, lim1)
    b1 = jax.random.uniform(k2, (hidden,), jnp.float32, -lim1, lim1)
    w2 = jax.random.uniform(k3, (hidden, action_dim), jnp.float32, -lim2, lim2)
    b2 = jax.random.uniform(k4, (action_dim,), jnp.float32, -lim2, lim2)
    return w1, b1, w2, b2


if __name__ == "__main__":
    STATE_DIM = 4      # CartPole observation size
    ACTION_DIM = 2     # CartPole action space
    HIDDEN = 128       # fixed by the PyTorch module
    BATCH = 64         # a small rollout's worth of states per call

    key = jax.random.PRNGKey(0)
    kx, kp = jax.random.split(key)
    x = jax.random.normal(kx, (BATCH, STATE_DIM), dtype=jnp.float32)
    w1, b1, w2, b2 = init_params(kp, STATE_DIM, HIDDEN, ACTION_DIM)

    probs = policy_net_forward(x, w1, b1, w2, b2)
    jax.block_until_ready(probs)

    # Reference check in plain JAX (same math as the PyTorch module, f32).
    h_ref = jnp.maximum(x @ w1 + b1, 0.0)
    ref = jax.nn.softmax(h_ref @ w2 + b2, axis=-1)
    assert probs.shape == (BATCH, ACTION_DIM)
    # bf16 fc2 weights -> a few e-3 absolute error budget on probabilities.
    assert jnp.allclose(probs, ref, atol=2e-3, rtol=2e-3)
    # Exact normalization (no approx reciprocal): rows sum to 1 to f32 eps.
    assert jnp.allclose(jnp.sum(probs, axis=-1), 1.0, atol=1e-5)

    print("KERNEL_OK")
</pallas_src>

<mosaic_0001>
module attributes {stable_mosaic.version = 11 : i64} {
  func.func @policy_net_kernel(%arg0: i32, %arg1: memref<64x8xf32, #tpu.memory_space<vmem>>, %arg2: memref<8x128xf32, #tpu.memory_space<vmem>>, %arg3: memref<1x128xf32, #tpu.memory_space<vmem>>, %arg4: memref<128x128xbf16, #tpu.memory_space<vmem>>, %arg5: memref<1x2xf32, #tpu.memory_space<vmem>>, %arg6: memref<64x2xf32, #tpu.memory_space<vmem>>) attributes {dimension_semantics = [#tpu.dimension_semantics<arbitrary>], iteration_bounds = array<i64: 1>, scalar_prefetch = 0 : i64, scratch_operands = 0 : i64, tpu.core_type = #tpu.core_type<tc>, window_params = [{transform_indices = @transform_0, window_bounds = array<i64: 64, 8>}, {pipeline_mode = #tpu.pipeline_mode<synchronous>, transform_indices = @transform_1, window_bounds = array<i64: 8, 128>}, {pipeline_mode = #tpu.pipeline_mode<synchronous>, transform_indices = @transform_2, window_bounds = array<i64: 1, 128>}, {pipeline_mode = #tpu.pipeline_mode<synchronous>, transform_indices = @transform_3, window_bounds = array<i64: 128, 128>}, {pipeline_mode = #tpu.pipeline_mode<synchronous>, transform_indices = @transform_4, window_bounds = array<i64: 1, 2>}, {transform_indices = @transform_5, window_bounds = array<i64: 64, 2>}]} {
    %c0 = arith.constant 0 : index
    %c0_0 = arith.constant 0 : index
    %0 = vector.load %arg1[%c0, %c0_0] : memref<64x8xf32, #tpu.memory_space<vmem>>, vector<64x8xf32>
    %c0_1 = arith.constant 0 : index
    %c0_2 = arith.constant 0 : index
    %1 = vector.load %arg2[%c0_1, %c0_2] : memref<8x128xf32, #tpu.memory_space<vmem>>, vector<8x128xf32>
    %cst = arith.constant dense<0.000000e+00> : vector<64x128xf32>
    %2 = tpu.matmul %0, %1, %cst {dimension_numbers = #tpu.dot_dimension_numbers<[1], [0], [0], [1], [0, 0, 1, 1], [], []>} : vector<64x8xf32>, vector<8x128xf32>, vector<64x128xf32> -> vector<64x128xf32>
    %c0_3 = arith.constant 0 : index
    %c0_4 = arith.constant 0 : index
    %3 = vector.load %arg3[%c0_3, %c0_4] : memref<1x128xf32, #tpu.memory_space<vmem>>, vector<1x128xf32>
    %4 = vector.broadcast %3 : vector<1x128xf32> to vector<64x128xf32>
    %5 = arith.addf %2, %4 : vector<64x128xf32>
    %cst_5 = arith.constant 0.000000e+00 : f32
    %6 = vector.broadcast %cst_5 : f32 to vector<64x128xf32>
    %7 = arith.maximumf %5, %6 : vector<64x128xf32>
    %8 = arith.truncf %7 : vector<64x128xf32> to vector<64x128xbf16>
    %c0_6 = arith.constant 0 : index
    %c0_7 = arith.constant 0 : index
    %9 = vector.load %arg4[%c0_6, %c0_7] : memref<128x128xbf16, #tpu.memory_space<vmem>>, vector<128x128xbf16>
    %cst_8 = arith.constant dense<0.000000e+00> : vector<64x128xf32>
    %10 = tpu.matmul %8, %9, %cst_8 {dimension_numbers = #tpu.dot_dimension_numbers<[1], [0], [0], [1], [0, 0, 1, 1], [], []>} : vector<64x128xbf16>, vector<128x128xbf16>, vector<64x128xf32> -> vector<64x128xf32>
    %11 = vector.extract_strided_slice %10 {offsets = [0, 0], sizes = [64, 2], strides = [1, 1]} : vector<64x128xf32> to vector<64x2xf32>
    %c0_9 = arith.constant 0 : index
    %c0_10 = arith.constant 0 : index
    %12 = vector.load %arg5[%c0_9, %c0_10] : memref<1x2xf32, #tpu.memory_space<vmem>>, vector<1x2xf32>
    %13 = vector.broadcast %12 : vector<1x2xf32> to vector<64x2xf32>
    %14 = arith.addf %11, %13 : vector<64x2xf32>
    %cst_11 = arith.constant dense<0xFF800000> : vector<64xf32>
    %15 = vector.multi_reduction <maximumf>, %14, %cst_11 [1] : vector<64x2xf32> to vector<64xf32>
    %16 = vector.shape_cast %15 : vector<64xf32> to vector<64x1xf32>
    %17 = vector.broadcast %16 : vector<64x1xf32> to vector<64x2xf32>
    %18 = arith.subf %14, %17 : vector<64x2xf32>
    %19 = math.exp %18 : vector<64x2xf32>
    %cst_12 = arith.constant dense<0.000000e+00> : vector<64xf32>
    %20 = vector.multi_reduction <add>, %19, %cst_12 [1] : vector<64x2xf32> to vector<64xf32>
    %21 = vector.shape_cast %20 : vector<64xf32> to vector<64x1xf32>
    %22 = vector.broadcast %21 : vector<64x1xf32> to vector<64x2xf32>
    %23 = arith.divf %19, %22 : vector<64x2xf32>
    %c0_13 = arith.constant 0 : index
    %c0_14 = arith.constant 0 : index
    %24 = vector.load %arg6[%c0_13, %c0_14] : memref<64x2xf32, #tpu.memory_space<vmem>>, vector<64x2xf32>
    tpu.vector_store %arg6[%c0_13, %c0_14], %23 {strides = array<i32>} : memref<64x2xf32, #tpu.memory_space<vmem>>, vector<64x2xf32>,
    return
  }
  func.func @transform_0(%arg0: i32) -> (i32, i32) {
    %c0_i32 = arith.constant 0 : i32
    %c0_i32_0 = arith.constant 0 : i32
    return %arg0, %c0_i32 : i32, i32
  }
  func.func @transform_1(%arg0: i32) -> (i32, i32) {
    %c0_i32 = arith.constant 0 : i32
    %c0_i32_0 = arith.constant 0 : i32
    %c0_i32_1 = arith.constant 0 : i32
    return %c0_i32, %c0_i32_0 : i32, i32
  }
  func.func @transform_2(%arg0: i32) -> (i32, i32) {
    %c0_i32 = arith.constant 0 : i32
    %c0_i32_0 = arith.constant 0 : i32
    %c0_i32_1 = arith.constant 0 : i32
    return %c0_i32, %c0_i32_0 : i32, i32
  }
  func.func @transform_3(%arg0: i32) -> (i32, i32) {
    %c0_i32 = arith.constant 0 : i32
    %c0_i32_0 = arith.constant 0 : i32
    %c0_i32_1 = arith.constant 0 : i32
    return %c0_i32, %c0_i32_0 : i32, i32
  }
  func.func @transform_4(%arg0: i32) -> (i32, i32) {
    %c0_i32 = arith.constant 0 : i32
    %c0_i32_0 = arith.constant 0 : i32
    %c0_i32_1 = arith.constant 0 : i32
    return %c0_i32, %c0_i32_0 : i32, i32
  }
  func.func @transform_5(%arg0: i32) -> (i32, i32) {
    %c0_i32 = arith.constant 0 : i32
    %c0_i32_0 = arith.constant 0 : i32
    return %arg0, %c0_i32 : i32, i32
  }
}

</mosaic_0001>

<bundles_post_ra>
// kernel: tpu_custom_call.1
= control target key start
LH: loop header
LB: loop body
LE: loop exit
PB: predicated region body
PF: predicated region fallthrough
CT: control target
= control target key end

     0   :  { %vm33_vm0 = vcmask 64512   ;;  %vm216_vm1 = vcmask 15360   ;;  %s694_s1 = inlined_call_operand.vmem [shape: f32[8,128], index: 1, kind: input, shape index: {}]   ;;  %s695_s0 = inlined_call_operand.vmem [shape: f32[64,8], index: 0, kind: input, shape index: {}]   ;;  %s696_s2 = inlined_call_operand.vmem [shape: f32[1,128], index: 2, kind: input, shape index: {}]   ;;  %s697_s3 = inlined_call_operand.vmem [shape: bf16[128,128], index: 3, kind: input, shape index: {}]   ;;  %s698_s4 = inlined_call_operand.vmem [shape: f32[1,2], index: 4, kind: input, shape index: {}]   ;;  %s699_s5 = inlined_call_operand.vmem [shape: f32[64,2], index: 5, kind: output, shape index: {}]  }
   0x1   :  { %v28_v0 = vld [vmem:[%s694_s1] sm:$0xff]  ;;  %v21_v2 = vld [vmem:[%s695_s0 + $0x8] sm:$0xff]  ;;  %v22_v3 = vld [vmem:[%s695_s0 + $0x10] sm:$0xff] }
   0x2   :  { %v20_v1 = vld [vmem:[%s695_s0] sm:$0xff]  ;;  %73 = vmatpush.msra.mxu0 %v28_v0  ;;  %v23_v4 = vld [vmem:[%s695_s0 + $0x18] sm:$0xff]  ;;  %v467_v6 = vld [vmem:[%s697_s3 + $0x30] sm:$0xff] }
   0x3   :  { %421 = vmatmul.msk.f32.vlgmr.msra.gmra.mxu0 %vm33_vm0, %v20_v1  ;;  %v468_v5 = vld [vmem:[%s697_s3 + $0x38] sm:$0xff]  ;;  %v24_v7 = vld [vmem:[%s695_s0 + $0x20] sm:$0xff]  ;;  %v466_v8 = vld [vmem:[%s697_s3 + $0x28] sm:$0xff] }
   0x4   :  { %175 = vmatpush.bf16.msra.mxu1 %v468_v5  ;;  %469 = vmatpush.bf16.msra.mxu2 %v468_v5  ;;  %v465_v9 = vld [vmem:[%s697_s3 + $0x20] sm:$0xff]  ;;  %v25_v10 = vld [vmem:[%s695_s0 + $0x28] sm:$0xff]  ;;  %v26_v11 = vld [vmem:[%s695_s0 + $0x30] sm:$0xff] }
   0x5   :  { %470 = vmatpush.bf16.msra.mxu3 %v468_v5  ;;  %v27_v12 = vld [vmem:[%s695_s0 + $0x38] sm:$0xff]  ;;  %v463_v14 = vld [vmem:[%s697_s3 + $0x10] sm:$0xff]  ;;  %v462_v15 = vld [vmem:[%s697_s3 + $0x8] sm:$0xff] }
   0x6   :  { %v464_v13 = vld [vmem:[%s697_s3 + $0x18] sm:$0xff]  ;;  %v461_v16 = vld [vmem:[%s697_s3] sm:$0xff] }
   0x7   :  { %v485_v18 = vld [vmem:[%s696_s2] ss:$0 sm:$0xff] }
   0x8   :  { %176 = vmatpush.bf16.msra.mxu1 %v467_v6  ;;  %471 = vmatpush.bf16.msra.mxu2 %v467_v6  ;;  %v486_v46 = vld [vmem:[%s698_s4] ss:$0 sm:$0xff] }
   0x9   :  { %472 = vmatpush.bf16.msra.mxu3 %v467_v6 }
   0xb   :  { %422 = vmatmul.msk.f32.gmra.mxu0 %vm33_vm0, %v21_v2 }
   0xc   :  { %177 = vmatpush.bf16.msra.mxu1 %v466_v8  ;;  %473 = vmatpush.bf16.msra.mxu2 %v466_v8 }
   0xd   :  { %474 = vmatpush.bf16.msra.mxu3 %v466_v8 }
  0x10   :  { %178 = vmatpush.bf16.msra.mxu1 %v465_v9  ;;  %475 = vmatpush.bf16.msra.mxu2 %v465_v9 }
  0x11   :  { %476 = vmatpush.bf16.msra.mxu3 %v465_v9 }
  0x13   :  { %423 = vmatmul.msk.f32.gmra.mxu0 %vm33_vm0, %v22_v3 }
  0x14   :  { %179 = vmatpush.bf16.msra.mxu1 %v464_v13  ;;  %477 = vmatpush.bf16.msra.mxu2 %v464_v13 }
  0x15   :  { %478 = vmatpush.bf16.msra.mxu3 %v464_v13 }
  0x18   :  { %180 = vmatpush.bf16.msra.mxu1 %v463_v14  ;;  %479 = vmatpush.bf16.msra.mxu2 %v463_v14 }
  0x19   :  { %480 = vmatpush.bf16.msra.mxu3 %v463_v14 }
  0x1b   :  { %424 = vmatmul.msk.f32.gmra.mxu0 %vm33_vm0, %v23_v4 }
  0x1c   :  { %181 = vmatpush.bf16.msra.mxu1 %v462_v15  ;;  %481 = vmatpush.bf16.msra.mxu2 %v462_v15 }
  0x1d   :  { %482 = vmatpush.bf16.msra.mxu3 %v462_v15 }
  0x20   :  { %182 = vmatpush.bf16.msra.mxu1 %v461_v16  ;;  %483 = vmatpush.bf16.msra.mxu2 %v461_v16 }
  0x21   :  { %484 = vmatpush.bf16.msra.mxu3 %v461_v16 }
  0x23   :  { %425 = vmatmul.msk.f32.gmra.mxu0 %vm33_vm0, %v24_v7 }
  0x2b   :  { %426 = vmatmul.msk.f32.gmra.mxu0 %vm33_vm0, %v25_v10 }
  0x33   :  { %427 = vmatmul.msk.f32.gmra.mxu0 %vm33_vm0, %v26_v11 }
  0x3b   :  { %428 = vmatmul.msk.f32.gmra.mxu0 %vm33_vm0, %v27_v12 }
  0x80   :  { %v75_v17 = vpop.f32.mrf.mxu0 }
  0x81   :  { %v76_v19 = vadd.f32 %v485_v18, %v75_v17 }
  0x83   :  { %v99_v22 = vmax.f32 %v76_v19, 0.0 }
  0x88   :  { %v78_v20 = vpop.f32.mrf.mxu0 }
  0x89   :  { %v79_v21 = vadd.f32 %v485_v18, %v78_v20 }
  0x8b   :  { %v100_v23 = vmax.f32 %v79_v21, 0.0 }
  0x8d   :  { %v107_v24 = vpack.c.bf16 %v100_v23, %v99_v22 }
  0x8f   :  { %183 = vmatmul.bf16.vlgmr.msra.gmra.mxu1 %v107_v24 }
  0x90   :  { %v81_v25 = vpop.f32.mrf.mxu0 }
  0x91   :  { %v82_v26 = vadd.f32 %v485_v18, %v81_v25 }
  0x93   :  { %v101_v29 = vmax.f32 %v82_v26, 0.0 }
  0x98   :  { %v84_v27 = vpop.f32.mrf.mxu0 }
  0x99   :  { %v85_v28 = vadd.f32 %v485_v18, %v84_v27 }
  0x9b   :  { %v102_v30 = vmax.f32 %v85_v28, 0.0 }
  0x9d   :  { %v108_v31 = vpack.c.bf16 %v102_v30, %v101_v29 }
  0x9f   :  { %188 = vmatmul.bf16.vlgmr.msra.gmra.mxu2 %v108_v31 }
  0xa0   :  { %v87_v32 = vpop.f32.mrf.mxu0 }
  0xa1   :  { %v88_v33 = vadd.f32 %v485_v18, %v87_v32 }
  0xa3   :  { %v103_v36 = vmax.f32 %v88_v33, 0.0 }
  0xa8   :  { %v90_v34 = vpop.f32.mrf.mxu0 }
  0xa9   :  { %v91_v35 = vadd.f32 %v485_v18, %v90_v34 }
  0xab   :  { %v104_v37 = vmax.f32 %v91_v35, 0.0 }
  0xad   :  { %v109_v38 = vpack.c.bf16 %v104_v37, %v103_v36 }
  0xaf   :  { %193 = vmatmul.bf16.vlgmr.msra.gmra.mxu3 %v109_v38 }
  0xb0   :  { %v93_v39 = vpop.f32.mrf.mxu0 }
  0xb1   :  { %v94_v40 = vadd.f32 %v485_v18, %v93_v39 }
  0xb3   :  { %v105_v43 = vmax.f32 %v94_v40, 0.0 }
  0xb8   :  { %v96_v41 = vpop.f32.mrf.mxu0 }
  0xb9   :  { %v97_v42 = vadd.f32 %v485_v18, %v96_v41 }
  0xbb   :  { %v106_v44 = vmax.f32 %v97_v42, 0.0 }
  0xbd   :  { %v110_v45 = vpack.c.bf16 %v106_v44, %v105_v43 }
  0xbf   :  { %198 = vmatmul.bf16.gmra.mxu3 %v110_v45 }
 0x10c   :  { %v184_v47 = vpop.f32.mrf.mxu1 }
 0x10d   :  { %v208_v48 = vadd.f32 %v486_v46, %v184_v47 }
 0x10f   :  { %v217_v49 = vsel %vm216_vm1, %v208_v48, -inf }
 0x110   :  { %218 = vmax.xlane.f32.xlu0 %v217_v49 }
 0x114   :  { %v186_v50 = vpop.f32.mrf.mxu1 }
 0x115   :  { %v209_v51 = vadd.f32 %v486_v46, %v186_v50 }
 0x117   :  { %v220_v52 = vsel %vm216_vm1, %v209_v51, -inf }
 0x118   :  { %221 = vmax.xlane.f32.xlu0 %v220_v52 }
 0x122   :  { %v189_v53 = vpop.f32.mrf.mxu2 }
 0x123   :  { %v210_v54 = vadd.f32 %v486_v46, %v189_v53 }
 0x125   :  { %v223_v55 = vsel %vm216_vm1, %v210_v54, -inf }
 0x126   :  { %224 = vmax.xlane.f32.xlu1 %v223_v55 }
 0x12a   :  { %v191_v56 = vpop.f32.mrf.mxu2 }
 0x12b   :  { %v211_v57 = vadd.f32 %v486_v46, %v191_v56 }
 0x12d   :  { %v226_v58 = vsel %vm216_vm1, %v211_v57, -inf }
 0x12e   :  { %227 = vmax.xlane.f32.xlu1 %v226_v58 }
 0x132   :  { %v194_v59 = vpop.f32.mrf.mxu3 }
 0x133   :  { %v212_v60 = vadd.f32 %v486_v46, %v194_v59 }
 0x135   :  { %v229_v61 = vsel %vm216_vm1, %v212_v60, -inf }
 0x136   :  { %230 = vmax.xlane.f32.xlu2 %v229_v61 }
 0x13a   :  { %v196_v62 = vpop.f32.mrf.mxu3 }
 0x13b   :  { %v213_v63 = vadd.f32 %v486_v46, %v196_v62 }
 0x13d   :  { %v232_v0 = vsel %vm216_vm1, %v213_v63, -inf }
 0x13e   :  { %233 = vmax.xlane.f32.xlu2 %v232_v0 }
 0x142   :  { %v199_v1 = vpop.f32.mrf.mxu3 }
 0x143   :  { %v214_v2 = vadd.f32 %v486_v46, %v199_v1 }
 0x145   :  { %v235_v3 = vsel %vm216_vm1, %v214_v2, -inf }
 0x146   :  { %236 = vmax.xlane.f32.xlu0 %v235_v3 }
 0x14a   :  { %v201_v4 = vpop.f32.mrf.mxu3 }
 0x14b   :  { %v215_v5 = vadd.f32 %v486_v46, %v201_v4 }
 0x14d   :  { %v238_v6 = vsel %vm216_vm1, %v215_v5, -inf }
 0x14e   :  { %239 = vmax.xlane.f32.xlu1 %v238_v6 }
 0x183   :  { %v219_v7 = vpop.xlane.xlu0 %218 }
 0x184   :  { %v241_v8 = vsub.f32 %v208_v48, %v219_v7 }
 0x186   :  { %v249_v9 = vmul.f32 1.442695, %v241_v8 }
 0x188   :  { %487 = vpow2.f32 %v249_v9 }
 0x18b   :  { %v222_v10 = vpop.xlane.xlu0 %221 }
 0x18c   :  { %v242_v11 = vsub.f32 %v209_v51, %v222_v10 }
 0x18e   :  { %v622_v12 = vpop.eup %487  ;;  %v251_v13 = vmul.f32 1.442695, %v242_v11 }
 0x18f   :  { %v265_v14 = vsel %vm216_vm1, %v622_v12, 0.0 }
 0x190   :  { %489 = vpow2.f32 %v251_v13  ;;  %266 = vadd.xlane.f32.xlu2 %v265_v14 }
 0x196   :  { %v626_v15 = vpop.eup %489 }
 0x197   :  { %v268_v16 = vsel %vm216_vm1, %v626_v15, 0.0 }
 0x198   :  { %269 = vadd.xlane.f32.xlu0 %v268_v16 }
 0x199   :  { %v225_v17 = vpop.xlane.xlu1 %224 }
 0x19a   :  { %v243_v18 = vsub.f32 %v210_v54, %v225_v17 }
 0x19c   :  { %v253_v19 = vmul.f32 1.442695, %v243_v18 }
 0x19e   :  { %491 = vpow2.f32 %v253_v19 }
 0x1a1   :  { %v228_v20 = vpop.xlane.xlu1 %227 }
 0x1a2   :  { %v244_v21 = vsub.f32 %v211_v57, %v228_v20 }
 0x1a4   :  { %v630_v22 = vpop.eup %491  ;;  %v255_v23 = vmul.f32 1.442695, %v244_v21 }
 0x1a5   :  { %v271_v24 = vsel %vm216_vm1, %v630_v22, 0.0 }
 0x1a6   :  { %493 = vpow2.f32 %v255_v23  ;;  %272 = vadd.xlane.f32.xlu1 %v271_v24 }
 0x1a9   :  { %v231_v25 = vpop.xlane.xlu2 %230 }
 0x1aa   :  { %v245_v26 = vsub.f32 %v212_v60, %v231_v25 }
 0x1ac   :  { %v634_v27 = vpop.eup %493  ;;  %v257_v28 = vmul.f32 1.442695, %v245_v26 }
 0x1ad   :  { %v274_v29 = vsel %vm216_vm1, %v634_v27, 0.0 }
 0x1ae   :  { %495 = vpow2.f32 %v257_v28  ;;  %275 = vadd.xlane.f32.xlu2 %v274_v29 }
 0x1b1   :  { %v234_v30 = vpop.xlane.xlu2 %233 }
 0x1b2   :  { %v246_v31 = vsub.f32 %v213_v63, %v234_v30 }
 0x1b4   :  { %v638_v32 = vpop.eup %495  ;;  %v259_v33 = vmul.f32 1.442695, %v246_v31 }
 0x1b5   :  { %v277_v34 = vsel %vm216_vm1, %v638_v32, 0.0 }
 0x1b6   :  { %497 = vpow2.f32 %v259_v33  ;;  %278 = vadd.xlane.f32.xlu0 %v277_v34 }
 0x1b9   :  { %v237_v35 = vpop.xlane.xlu0 %236 }
 0x1ba   :  { %v247_v36 = vsub.f32 %v214_v2, %v237_v35 }
 0x1bc   :  { %v642_v37 = vpop.eup %497  ;;  %v261_v38 = vmul.f32 1.442695, %v247_v36 }
 0x1bd   :  { %v280_v39 = vsel %vm216_vm1, %v642_v37, 0.0 }
 0x1be   :  { %499 = vpow2.f32 %v261_v38  ;;  %281 = vadd.xlane.f32.xlu1 %v280_v39 }
 0x1c1   :  { %v240_v40 = vpop.xlane.xlu1 %239 }
 0x1c2   :  { %v248_v41 = vsub.f32 %v215_v5, %v240_v40 }
 0x1c4   :  { %v646_v42 = vpop.eup %499  ;;  %v263_v43 = vmul.f32 1.442695, %v248_v41 }
 0x1c5   :  { %v283_v44 = vsel %vm216_vm1, %v646_v42, 0.0 }
 0x1c6   :  { %501 = vpow2.f32 %v263_v43  ;;  %284 = vadd.xlane.f32.xlu2 %v283_v44 }
 0x1cc   :  { %v650_v45 = vpop.eup %501 }
 0x1cd   :  { %v286_v46 = vsel %vm216_vm1, %v650_v45, 0.0 }
 0x1ce   :  { %287 = vadd.xlane.f32.xlu0 %v286_v46 }
 0x203   :  { %v267_v47 = vpop.xlane.xlu2 %266 }
 0x204   :  { %503 = vrcp.f32 %v267_v47  ;;  %v300_v52 = vand.u32 2147483648, %v267_v47  ;;  %v298_v54 = vand.u32 2147483647, %v267_v47  ;;  %vm294_vm3 = vweird.f32 %v267_v47 }
 0x206   :  { %v301_v57 = vor.u32 1.1754944e-38, %v300_v52  ;;  %vm299_vm5 = vcmp.eq.f32.partialorder %v298_v54, 8.507059e+37 }
 0x20a   :  { %v504_v48 = vpop.eup %503 }
 0x20b   :  { %v290_v49 = vmul.f32 %v504_v48, %v267_v47  ;;  %v270_v50 = vpop.xlane.xlu0 %269  ;;  %vm295_vm2 = vweird.f32 %v504_v48 }
 0x20c   :  { %505 = vrcp.f32 %v270_v50  ;;  %vm296_vm4 = vmor %vm294_vm3, %vm295_vm2  ;;  %v315_v63 = vand.u32 2147483648, %v270_v50  ;;  %v313_v1 = vand.u32 2147483647, %v270_v50  ;;  %vm309_vm7 = vweird.f32 %v270_v50 }
 0x20d   :  { %v291_v51 = vsub.f32 1.0, %v290_v49 }
 0x20e   :  { %v316_v4 = vor.u32 1.1754944e-38, %v315_v63  ;;  %vm314_vm9 = vcmp.eq.f32.partialorder %v313_v1, 8.507059e+37 }
 0x20f   :  { %v292_v53 = vmul.f32 %v504_v48, %v291_v51 }
 0x211   :  { %v293_v55 = vadd.f32 %v504_v48, %v292_v53 }
 0x212   :  { %v506_v56 = vpop.eup %505 }
 0x213   :  { %v297_v58 = vsel %vm296_vm4, %v504_v48, %v293_v55  ;;  %v305_v59 = vmul.f32 %v506_v56, %v270_v50  ;;  %vm310_vm6 = vweird.f32 %v506_v56 }
 0x214   :  { %v302_v60 = vsel %vm299_vm5, %v301_v57, %v297_v58  ;;  %vm311_vm8 = vmor %vm309_vm7, %vm310_vm6 }
 0x215   :  { %v303_v61 = vmul.f32 %v622_v12, %v302_v60  ;;  %v306_v62 = vsub.f32 1.0, %v305_v59 }
 0x217   :  { %409 = vst.msk [vmem:[%s699_s5] sm:$0xff] %vm216_vm1, %v303_v61  ;;  %v307_v0 = vmul.f32 %v506_v56, %v306_v62 }
 0x219   :  { %v308_v2 = vadd.f32 %v506_v56, %v307_v0  ;;  %v273_v3 = vpop.xlane.xlu1 %272 }
 0x21a   :  { %507 = vrcp.f32 %v273_v3  ;;  %v330_v12 = vand.u32 2147483648, %v273_v3  ;;  %v328_v14 = vand.u32 2147483647, %v273_v3  ;;  %vm324_vm11 = vweird.f32 %v273_v3 }
 0x21b   :  { %v312_v5 = vsel %vm311_vm8, %v506_v56, %v308_v2 }
 0x21c   :  { %v317_v6 = vsel %vm314_vm9, %v316_v4, %v312_v5  ;;  %v331_v18 = vor.u32 1.1754944e-38, %v330_v12  ;;  %vm329_vm13 = vcmp.eq.f32.partialorder %v328_v14, 8.507059e+37 }
 0x21d   :  { %v318_v7 = vmul.f32 %v626_v15, %v317_v6 }
 0x21f   :  { %410 = vst.msk [vmem:[%s699_s5 + $0x8] sm:$0xff] %vm216_vm1, %v318_v7 }
 0x220   :  { %v508_v8 = vpop.eup %507 }
 0x221   :  { %v320_v9 = vmul.f32 %v508_v8, %v273_v3  ;;  %v276_v10 = vpop.xlane.xlu2 %275  ;;  %vm325_vm10 = vweird.f32 %v508_v8 }
 0x222   :  { %509 = vrcp.f32 %v276_v10  ;;  %vm326_vm12 = vmor %vm324_vm11, %vm325_vm10  ;;  %v345_v25 = vand.u32 2147483648, %v276_v10  ;;  %v343_v28 = vand.u32 2147483647, %v276_v10  ;;  %vm339_vm15 = vweird.f32 %v276_v10 }
 0x223   :  { %v321_v11 = vsub.f32 1.0, %v320_v9 }
 0x224   :  { %v346_v31 = vor.u32 1.1754944e-38, %v345_v25  ;;  %vm344_vm2 = vcmp.eq.f32.partialorder %v343_v28, 8.507059e+37 }
 0x225   :  { %v322_v13 = vmul.f32 %v508_v8, %v321_v11 }
 0x227   :  { %v323_v16 = vadd.f32 %v508_v8, %v322_v13 }
 0x228   :  { %v510_v17 = vpop.eup %509 }
 0x229   :  { %v327_v15 = vsel %vm326_vm12, %v508_v8, %v323_v16  ;;  %v335_v19 = vmul.f32 %v510_v17, %v276_v10  ;;  %v279_v20 = vpop.xlane.xlu0 %278  ;;  %vm340_vm14 = vweird.f32 %v510_v17 }
 0x22a   :  { %v332_v21 = vsel %vm329_vm13, %v331_v18, %v327_v15  ;;  %511 = vrcp.f32 %v279_v20  ;;  %vm341_vm0 = vmor %vm339_vm15, %vm340_vm14  ;;  %v360_v39 = vand.u32 2147483648, %v279_v20  ;;  %v358_v41 = vand.u32 2147483647, %v279_v20 }
 0x22b   :  { %v333_v23 = vmul.f32 %v630_v22, %v332_v21  ;;  %v336_v24 = vsub.f32 1.0, %v335_v19  ;;  %vm354_vm4 = vweird.f32 %v279_v20 }
 0x22c   :  { %v361_v46 = vor.u32 1.1754944e-38, %v360_v39  ;;  %vm359_vm6 = vcmp.eq.f32.partialorder %v358_v41, 8.507059e+37 }
 0x22d   :  { %411 = vst.msk [vmem:[%s699_s5 + $0x10] sm:$0xff] %vm216_vm1, %v333_v23  ;;  %v337_v26 = vmul.f32 %v510_v17, %v336_v24 }
 0x22f   :  { %v338_v29 = vadd.f32 %v510_v17, %v337_v26 }
 0x230   :  { %v512_v30 = vpop.eup %511 }
 0x231   :  { %v342_v33 = vsel %vm341_vm0, %v510_v17, %v338_v29  ;;  %v350_v34 = vmul.f32 %v512_v30, %v279_v20  ;;  %v282_v35 = vpop.xlane.xlu1 %281  ;;  %vm355_vm3 = vweird.f32 %v512_v30 }
 0x232   :  { %v347_v22 = vsel %vm344_vm2, %v346_v31, %v342_v33  ;;  %513 = vrcp.f32 %v282_v35  ;;  %vm356_vm5 = vmor %vm354_vm4, %vm355_vm3  ;;  %v375_v52 = vand.u32 2147483648, %v282_v35  ;;  %v373_v54 = vand.u32 2147483647, %v282_v35 }
 0x233   :  { %v348_v36 = vmul.f32 %v634_v27, %v347_v22  ;;  %v351_v38 = vsub.f32 1.0, %v350_v34  ;;  %vm369_vm8 = vweird.f32 %v282_v35 }
 0x234   :  { %v376_v57 = vor.u32 1.1754944e-38, %v375_v52  ;;  %vm374_vm10 = vcmp.eq.f32.partialorder %v373_v54, 8.507059e+37 }
 0x235   :  { %412 = vst.msk [vmem:[%s699_s5 + $0x18] sm:$0xff] %vm216_vm1, %v348_v36  ;;  %v352_v40 = vmul.f32 %v512_v30, %v351_v38 }
 0x237   :  { %v353_v43 = vadd.f32 %v512_v30, %v352_v40 }
 0x238   :  { %v514_v44 = vpop.eup %513 }
 0x239   :  { %v357_v47 = vsel %vm356_vm5, %v512_v30, %v353_v43  ;;  %v365_v48 = vmul.f32 %v514_v44, %v282_v35  ;;  %v285_v49 = vpop.xlane.xlu2 %284  ;;  %vm370_vm7 = vweird.f32 %v514_v44 }
 0x23a   :  { %v362_v27 = vsel %vm359_vm6, %v361_v46, %v357_v47  ;;  %515 = vrcp.f32 %v285_v49  ;;  %vm371_vm9 = vmor %vm369_vm8, %vm370_vm7  ;;  %v390_v63 = vand.u32 2147483648, %v285_v49  ;;  %v388_v1 = vand.u32 2147483647, %v285_v49 }
 0x23b   :  { %v363_v50 = vmul.f32 %v638_v32, %v362_v27  ;;  %v366_v51 = vsub.f32 1.0, %v365_v48  ;;  %vm384_vm12 = vweird.f32 %v285_v49 }
 0x23c   :  { %v391_v4 = vor.u32 1.1754944e-38, %v390_v63  ;;  %vm389_vm14 = vcmp.eq.f32.partialorder %v388_v1, 8.507059e+37 }
 0x23d   :  { %413 = vst.msk [vmem:[%s699_s5 + $0x20] sm:$0xff] %vm216_vm1, %v363_v50  ;;  %v367_v53 = vmul.f32 %v514_v44, %v366_v51 }
 0x23f   :  { %v368_v55 = vadd.f32 %v514_v44, %v367_v53 }
 0x240   :  { %v516_v56 = vpop.eup %515 }
 0x241   :  { %v372_v58 = vsel %vm371_vm9, %v514_v44, %v368_v55  ;;  %v380_v59 = vmul.f32 %v516_v56, %v285_v49  ;;  %v288_v60 = vpop.xlane.xlu0 %287  ;;  %vm385_vm11 = vweird.f32 %v516_v56 }
 0x242   :  { %v377_v32 = vsel %vm374_vm10, %v376_v57, %v372_v58  ;;  %517 = vrcp.f32 %v288_v60  ;;  %vm386_vm13 = vmor %vm384_vm12, %vm385_vm11  ;;  %v405_v9 = vand.u32 2147483648, %v288_v60  ;;  %v403_v11 = vand.u32 2147483647, %v288_v60 }
 0x243   :  { %v378_v61 = vmul.f32 %v642_v37, %v377_v32  ;;  %v381_v62 = vsub.f32 1.0, %v380_v59  ;;  %vm399_vm0 = vweird.f32 %v288_v60 }
 0x244   :  { %v406_v13 = vor.u32 1.1754944e-38, %v405_v9  ;;  %vm404_vm3 = vcmp.eq.f32.partialorder %v403_v11, 8.507059e+37 }
 0x245   :  { %414 = vst.msk [vmem:[%s699_s5 + $0x28] sm:$0xff] %vm216_vm1, %v378_v61  ;;  %v382_v0 = vmul.f32 %v516_v56, %v381_v62 }
 0x247   :  { %v383_v2 = vadd.f32 %v516_v56, %v382_v0 }
 0x248   :  { %v518_v3 = vpop.eup %517 }
 0x249   :  { %v387_v5 = vsel %vm386_vm13, %v516_v56, %v383_v2  ;;  %v395_v6 = vmul.f32 %v518_v3, %v288_v60  ;;  %vm400_vm15 = vweird.f32 %v518_v3 }
 0x24a   :  { %v392_v7 = vsel %vm389_vm14, %v391_v4, %v387_v5  ;;  %vm401_vm2 = vmor %vm399_vm0, %vm400_vm15 }
 0x24b   :  { %v393_v37 = vmul.f32 %v646_v42, %v392_v7  ;;  %v396_v8 = vsub.f32 1.0, %v395_v6 }
 0x24d   :  { %415 = vst.msk [vmem:[%s699_s5 + $0x30] sm:$0xff] %vm216_vm1, %v393_v37  ;;  %v397_v10 = vmul.f32 %v518_v3, %v396_v8 }
 0x24f   :  { %v398_v12 = vadd.f32 %v518_v3, %v397_v10 }
 0x251   :  { %v402_v14 = vsel %vm401_vm2, %v518_v3, %v398_v12 }
 0x252   :  { %v407_v16 = vsel %vm404_vm3, %v406_v13, %v402_v14 }
 0x253   :  { %v408_v17 = vmul.f32 %v650_v45, %v407_v16 }
 0x255   :  { %416 = vst.msk [vmem:[%s699_s5 + $0x38] sm:$0xff] %vm216_vm1, %v408_v17 }

</bundles_post_ra>
